<compile_context>
chip_gen: v7x
topology: tpu7x:2x2x1
jax: 0.10.0
libtpu: 0.0.40
codegen_flags: <defaults>
</compile_context>

<pallas_src>
import functools

import jax
import jax.numpy as jnp
from jax.experimental import pallas as pl
from jax.experimental.pallas import tpu as pltpu

LANE = 128


def _round_up(x, m):
    return ((x + m - 1) // m) * m


def _router_kernel(x_ref, w_ref, b_ref, o_ref, acc_ref, *, inv_hw):
    # x_ref  : (tb, C, t_hw)  activation tile, native dtype (f32 / bf16)
    # w_ref  : (C, E)         f32 (torch weight, pre-transposed)
    # b_ref  : (1, E)         f32
    # o_ref  : (tb, E)        f32
    # acc_ref: (tb, C)        f32 scratch -- running spatial sum per batch tile
    k = pl.program_id(1)

    @pl.when(k == 0)
    def _init():
        acc_ref[...] = jnp.zeros_like(acc_ref)

    # Hot loop: load + lane-reduce + add only.  Accumulate raw sums in f32;
    # the mean scale is applied once at finalize, not per element.
    x = x_ref[...].astype(jnp.float32)
    acc_ref[...] += jnp.sum(x, axis=-1)            # (tb, C)

    @pl.when(k == pl.num_programs(1) - 1)
    def _finalize():
        pooled = acc_ref[...] * inv_hw                                  # (tb, C)
        logits = jnp.dot(pooled, w_ref[...],
                         preferred_element_type=jnp.float32) + b_ref[...]  # (tb, E)
        m = jnp.max(logits, axis=-1, keepdims=True)
        e = jnp.exp(logits - m)
        denom = jnp.sum(e, axis=-1, keepdims=True)
        # EUP approximate reciprocal (free slot); ~1e-4 relative error.
        o_ref[...] = (e * pl.reciprocal(denom, approx=True)).astype(o_ref.dtype)


def prepare_router_params(weight, bias):
    """Hoist the (E,C)->(C,E) transpose / bias reshape out of the per-call path."""
    E, C = weight.shape
    w_t = jnp.asarray(weight, jnp.float32).T           # (C, E)
    b2d = jnp.asarray(bias, jnp.float32).reshape(1, E)  # (1, E)
    return w_t, b2d


def router_forward(x_nchw, w_t, b2d, *, tb=None, t_hw=None,
                   vmem_limit_bytes=32 * 1024 * 1024):
    """Global-avg-pool -> Linear -> Softmax.

    x_nchw: (B, C, H, W), streamed in its native dtype (f32 or bf16).
    w_t   : (C, E) f32 pre-transposed torch weight; b2d: (1, E) f32 bias.
    Returns (B, E) f32 routing probabilities.
    """
    B, C, H, W = x_nchw.shape
    Cw, E = w_t.shape
    assert Cw == C, "weight in_channels must match x channels"
    HW = H * W

    # NCHW -> (B, C, HW): spatial stays the last (lane) axis so the pool is a lane reduce.
    x = x_nchw.reshape(B, C, HW)

    # ---- spatial tile: multiple of 128 lanes (default 512) ----
    if t_hw is None:
        t_hw = 512
    t_hw = min(_round_up(t_hw, LANE), _round_up(HW, LANE))
    HW_pad = _round_up(HW, t_hw)

    # ---- batch tile: full batch if small, else a sublane-aligned tile ----
    if tb is None:
        tb = 8
    if tb >= B:
        tb = B
        B_pad = B
    else:
        tb = _round_up(tb, 8)
        B_pad = _round_up(B, tb)

    pad_hw = HW_pad - HW
    pad_b = B_pad - B
    if pad_hw or pad_b:
        # Zero padding leaves the spatial sum unchanged (we divide by the true H*W);
        # padded batch rows are sliced off at the end.
        x = jnp.pad(x, ((0, pad_b), (0, 0), (0, pad_hw)))

    grid = (B_pad // tb, HW_pad // t_hw)
    kernel = functools.partial(_router_kernel, inv_hw=1.0 / float(HW))

    out = pl.pallas_call(
        kernel,
        out_shape=jax.ShapeDtypeStruct((B_pad, E), jnp.float32),
        grid_spec=pltpu.PrefetchScalarGridSpec(
            num_scalar_prefetch=0,
            grid=grid,
            in_specs=[
                pl.BlockSpec((tb, C, t_hw), lambda i, k: (i, 0, k)),  # activation tile
                pl.BlockSpec((C, E), lambda i, k: (0, 0)),            # weight (resident)
                pl.BlockSpec((1, E), lambda i, k: (0, 0)),            # bias (resident)
            ],
            out_specs=pl.BlockSpec((tb, E), lambda i, k: (i, 0)),
            scratch_shapes=[pltpu.VMEM((tb, C), jnp.float32)],
        ),
        compiler_params=pltpu.CompilerParams(
            dimension_semantics=("parallel", "arbitrary"),
            vmem_limit_bytes=vmem_limit_bytes,
        ),
    )(x, w_t, b2d)

    return out[:B] if B_pad != B else out


if __name__ == "__main__":
    key = jax.random.PRNGKey(0)
    kx, kw, kb = jax.random.split(key, 3)

    B, C, H, W = 2, 4, 16, 16
    num_experts = 2

    x = jax.random.normal(kx, (B, C, H, W), dtype=jnp.float32)

    # Deterministic init mimicking nn.Linear's uniform(-1/sqrt(C), 1/sqrt(C))
    bound = 1.0 / (C ** 0.5)
    weight = jax.random.uniform(kw, (num_experts, C), minval=-bound, maxval=bound,
                                dtype=jnp.float32)
    bias = jax.random.uniform(kb, (num_experts,), minval=-bound, maxval=bound,
                              dtype=jnp.float32)

    w_t, b2d = prepare_router_params(weight, bias)

    # t_hw=128 -> two reduction steps over the 256 spatial positions, exercising
    # the init / accumulate / finalize path of the pipelined grid.
    out = router_forward(x, w_t, b2d, t_hw=128)
    out = jax.block_until_ready(out)

    # Reference in plain JAX (same math as the PyTorch module).
    pooled_ref = jnp.mean(x, axis=(2, 3))
    logits_ref = pooled_ref @ weight.T + bias
    ref = jax.nn.softmax(logits_ref, axis=1)

    assert out.shape == (B, num_experts)
    # Tolerance loosened slightly because the softmax normalization uses the
    # EUP approximate reciprocal.
    assert jnp.allclose(out, ref, atol=2e-3, rtol=2e-3), float(jnp.max(jnp.abs(out - ref)))
    assert jnp.allclose(jnp.sum(out, axis=1), 1.0, atol=2e-3)

    print("KERNEL_OK")
</pallas_src>

<mosaic_0001>
module attributes {stable_mosaic.version = 11 : i64} {
  func.func @_router_kernel(%arg0: i32, %arg1: i32, %arg2: memref<2x4x128xf32, #tpu.memory_space<vmem>>, %arg3: memref<4x2xf32, #tpu.memory_space<vmem>>, %arg4: memref<1x2xf32, #tpu.memory_space<vmem>>, %arg5: memref<2x2xf32, #tpu.memory_space<vmem>>, %arg6: memref<2x4xf32, #tpu.memory_space<vmem>>) attributes {dimension_semantics = [#tpu.dimension_semantics<parallel>, #tpu.dimension_semantics<arbitrary>], iteration_bounds = array<i64: 1, 2>, scalar_prefetch = 0 : i64, scratch_operands = 1 : i64, tpu.core_type = #tpu.core_type<tc>, window_params = [{transform_indices = @transform_0, window_bounds = array<i64: 2, 4, 128>}, {pipeline_mode = #tpu.pipeline_mode<synchronous>, transform_indices = @transform_1, window_bounds = array<i64: 4, 2>}, {pipeline_mode = #tpu.pipeline_mode<synchronous>, transform_indices = @transform_2, window_bounds = array<i64: 1, 2>}, {transform_indices = @transform_3, window_bounds = array<i64: 2, 2>}]} {
    %c0_i32 = arith.constant 0 : i32
    %0 = arith.cmpi eq, %arg1, %c0_i32 : i32
    %1 = arith.extui %0 : i1 to i32
    %c0_i32_0 = arith.constant 0 : i32
    %2 = arith.cmpi ne, %1, %c0_i32_0 : i32
    scf.if %2 {
      %cst_8 = arith.constant 0.000000e+00 : f32
      %11 = vector.broadcast %cst_8 : f32 to vector<2x4xf32>
      %c0_9 = arith.constant 0 : index
      %c0_10 = arith.constant 0 : index
      %12 = vector.load %arg6[%c0_9, %c0_10] : memref<2x4xf32, #tpu.memory_space<vmem>>, vector<2x4xf32>
      tpu.vector_store %arg6[%c0_9, %c0_10], %11 {strides = array<i32>} : memref<2x4xf32, #tpu.memory_space<vmem>>, vector<2x4xf32>,
    } else {
    }
    %c0 = arith.constant 0 : index
    %c0_1 = arith.constant 0 : index
    %c0_2 = arith.constant 0 : index
    %3 = vector.load %arg2[%c0, %c0_1, %c0_2] : memref<2x4x128xf32, #tpu.memory_space<vmem>>, vector<2x4x128xf32>
    %c0_3 = arith.constant 0 : index
    %c0_4 = arith.constant 0 : index
    %4 = vector.load %arg6[%c0_3, %c0_4] : memref<2x4xf32, #tpu.memory_space<vmem>>, vector<2x4xf32>
    %cst = arith.constant dense<0.000000e+00> : vector<2x4xf32>
    %5 = vector.multi_reduction <add>, %3, %cst [2] : vector<2x4x128xf32> to vector<2x4xf32>
    %6 = arith.addf %4, %5 : vector<2x4xf32>
    %c0_5 = arith.constant 0 : index
    %c0_6 = arith.constant 0 : index
    %7 = vector.load %arg6[%c0_5, %c0_6] : memref<2x4xf32, #tpu.memory_space<vmem>>, vector<2x4xf32>
    tpu.vector_store %arg6[%c0_5, %c0_6], %6 {strides = array<i32>} : memref<2x4xf32, #tpu.memory_space<vmem>>, vector<2x4xf32>,
    %c1_i32 = arith.constant 1 : i32
    %8 = arith.cmpi eq, %arg1, %c1_i32 : i32
    %9 = arith.extui %8 : i1 to i32
    %c0_i32_7 = arith.constant 0 : i32
    %10 = arith.cmpi ne, %9, %c0_i32_7 : i32
    scf.if %10 {
      %c0_8 = arith.constant 0 : index
      %c0_9 = arith.constant 0 : index
      %11 = vector.load %arg6[%c0_8, %c0_9] : memref<2x4xf32, #tpu.memory_space<vmem>>, vector<2x4xf32>
      %cst_10 = arith.constant 3.906250e-03 : f32
      %12 = vector.broadcast %cst_10 : f32 to vector<2x4xf32>
      %13 = arith.mulf %11, %12 : vector<2x4xf32>
      %c0_11 = arith.constant 0 : index
      %c0_12 = arith.constant 0 : index
      %14 = vector.load %arg3[%c0_11, %c0_12] : memref<4x2xf32, #tpu.memory_space<vmem>>, vector<4x2xf32>
      %cst_13 = arith.constant dense<0.000000e+00> : vector<2x2xf32>
      %15 = tpu.matmul %13, %14, %cst_13 {dimension_numbers = #tpu.dot_dimension_numbers<[1], [0], [0], [1], [0, 0, 1, 1], [], []>} : vector<2x4xf32>, vector<4x2xf32>, vector<2x2xf32> -> vector<2x2xf32>
      %c0_14 = arith.constant 0 : index
      %c0_15 = arith.constant 0 : index
      %16 = vector.load %arg4[%c0_14, %c0_15] : memref<1x2xf32, #tpu.memory_space<vmem>>, vector<1x2xf32>
      %17 = vector.broadcast %16 : vector<1x2xf32> to vector<2x2xf32>
      %18 = arith.addf %15, %17 : vector<2x2xf32>
      %cst_16 = arith.constant dense<0xFF800000> : vector<2xf32>
      %19 = vector.multi_reduction <maximumf>, %18, %cst_16 [1] : vector<2x2xf32> to vector<2xf32>
      %20 = vector.shape_cast %19 : vector<2xf32> to vector<2x1xf32>
      %21 = vector.broadcast %20 : vector<2x1xf32> to vector<2x2xf32>
      %22 = arith.subf %18, %21 : vector<2x2xf32>
      %23 = math.exp %22 : vector<2x2xf32>
      %cst_17 = arith.constant dense<0.000000e+00> : vector<2xf32>
      %24 = vector.multi_reduction <add>, %23, %cst_17 [1] : vector<2x2xf32> to vector<2xf32>
      %25 = vector.shape_cast %24 : vector<2xf32> to vector<2x1xf32>
      %26 = tpu.reciprocal %25 {approx = true} : vector<2x1xf32> -> vector<2x1xf32>
      %27 = vector.broadcast %26 : vector<2x1xf32> to vector<2x2xf32>
      %28 = arith.mulf %23, %27 : vector<2x2xf32>
      %c0_18 = arith.constant 0 : index
      %c0_19 = arith.constant 0 : index
      %29 = vector.load %arg5[%c0_18, %c0_19] : memref<2x2xf32, #tpu.memory_space<vmem>>, vector<2x2xf32>
      tpu.vector_store %arg5[%c0_18, %c0_19], %28 {strides = array<i32>} : memref<2x2xf32, #tpu.memory_space<vmem>>, vector<2x2xf32>,
    } else {
    }
    return
  }
  func.func @transform_0(%arg0: i32, %arg1: i32) -> (i32, i32, i32) {
    %c0_i32 = arith.constant 0 : i32
    %c0_i32_0 = arith.constant 0 : i32
    return %arg0, %c0_i32, %arg1 : i32, i32, i32
  }
  func.func @transform_1(%arg0: i32, %arg1: i32) -> (i32, i32) {
    %c0_i32 = arith.constant 0 : i32
    %c0_i32_0 = arith.constant 0 : i32
    %c0_i32_1 = arith.constant 0 : i32
    return %c0_i32, %c0_i32_0 : i32, i32
  }
  func.func @transform_2(%arg0: i32, %arg1: i32) -> (i32, i32) {
    %c0_i32 = arith.constant 0 : i32
    %c0_i32_0 = arith.constant 0 : i32
    %c0_i32_1 = arith.constant 0 : i32
    return %c0_i32, %c0_i32_0 : i32, i32
  }
  func.func @transform_3(%arg0: i32, %arg1: i32) -> (i32, i32) {
    %c0_i32 = arith.constant 0 : i32
    %c0_i32_0 = arith.constant 0 : i32
    return %arg0, %c0_i32 : i32, i32
  }
}

</mosaic_0001>

<bundles_post_ra>
// kernel: tpu_custom_call.1
= control target key start
LH: loop header
LB: loop body
LE: loop exit
PB: predicated region body
PF: predicated region fallthrough
CT: control target
= control target key end

     0   :  { %8 = vsyncpa [#allocation4], 0  ;;  %s809_s0 = inlined_call_operand.hbm [shape: f32[2,4,256], index: 0, kind: input, shape index: {}]   ;;  %s810_s1 = inlined_call_operand.vmem [shape: f32[4,2], index: 1, kind: input, shape index: {}]   ;;  %s811_s2 = inlined_call_operand.vmem [shape: f32[1,2], index: 2, kind: input, shape index: {}]   ;;  %s812_s3 = inlined_call_operand.hbm [shape: f32[2,2], index: 3, kind: output, shape index: {}]  }
   0x1   :  { %10 = vsyncpa [#allocation4 + $0x1], 0 }
   0x2   :  { %11 = vsyncpa [#allocation5], 0  ;;  %s644_s12 = smov 0   ;;  %s646_s13 = smov 0  }
   0x3   :  { %s648_s14 = smov 0   ;;  %s650_s15 = smov 0  }
   0x4   :  { %s652_s16 = smov 0   ;;  %s654_s17 = smov 0  }
   0x5 LB: > { %s409_s18 = sadd.s32 4294967295, %s614_s17   ;;  %s26_s19 = sadd.s32 1, %s610_s16  ;;  %s614_s17 = sphi %s654_s17, %s17_s17   ;;  %s610_s16 = sphi %s652_s16, %s822_s16   ;;  %s606_s15 = sphi %s650_s15, %s821_s15   ;;  %s602_s14 = sphi %s648_s14, %s820_s14   ;;  %s598_s13 = sphi %s646_s13, %s819_s13   ;;  %s594_s12 = sphi %s644_s12, %s818_s12  }
   0x6   : > { %p27_p0 = scmp.ge.s32.totalorder %s26_s19, 2  ;;  %s38_s20 = sadd.s32 1, %s602_s14 }
   0x7   : > { %p45_p1 = scmp.ne.s32.totalorder %s602_s14, %s598_s13  ;;  %p46_p2 = scmp.eq.s32.totalorder %s614_s17, 0 }
   0x8   : > { %s824_s19 = smov (%p27_p0, %s26_s19), 0  ;;  %p51_p4 = scmp.ne.s32.totalorder %s598_s13, %s594_s12 }
   0x9   : > { %p680_p3 = por %p46_p2, %p45_p1  ;;  %s34_s22 = ssub.s32 %s610_s16, %s824_s19 }
   0xa   : > { %p52_p5 = scmp.eq.s32.totalorder %s409_s18, 0  ;;  %p36_p6 = scmp.eq.s32.totalorder %s34_s22, 0 }
   0xb   : > { %p442_p8 = scmp.lt.s32.totalorder %s614_s17, 2  ;;  %s149_s25 = sand.u32 1, %s602_s14  }
   0xc   : > { %p689_p7 = por %p52_p5, %p51_p4  ;;  %s413_s26 = sshll.u32 %s610_s16, 6 }
   0xd   : > { %s695_s24 = scalar_select %p36_p6, %s602_s14, %s38_s20  }
   0xe   : > { %s412_s27 = sshll.u32 %s149_s25, 3  ;;  %s702_s30 = scalar_lea.hbm %s809_s0, %s413_s26 }
   0xf   : > { %s153_s4 = scalar_lea.vmem [#allocation3], %s412_s27  ;;  %p706_p9 = pnand %p442_p8, %p680_p3 }
  0x10   : > { %s162_s5 = sshll.u32 %s153_s4, 4  ;;  %s713_s7 = scalar_lea.sflag [#allocation4], %s149_s25  ;;  %s710_s5 = int_to_ptr.vmem [resolvable:$true] %s162_s5 }
  0x11   : > { %s504_s8 = scalar_lea.hbm %s702_s30, 128  ;;  %p506_p12 = pneg %p706_p9 }
  0x12   : > { %p505_p11 = scmp.ne.s32.totalorder %s702_s30, %s504_s8  ;;  %s509_s11 = scalar_lea.hbm %s809_s0, 256 }
  0x13   : > { %p510_p1 = scmp.lt.u32.totalorder %s702_s30, %s809_s0  ;;  %p511_p2 = scmp.lt.u32.totalorder %s509_s11, %s504_s8 }
  0x14   : > { %p507_p13 = pnand %p506_p12, %p505_p11  ;;  %p513_p4 = scmp.lt.u32.totalorder %s504_s8, %s702_s30 }
  0x15   : > { %p512_p3 = por %p511_p2, %p510_p1 }
  0x16   : > { %p508_p0 = pneg %p507_p13 }
  0x17   : > { %p514_p5 = por %p513_p4, %p512_p3 }
  0x19   : > { %p515_p6 = pnand %p514_p5, %p508_p0 }
  0x1b   : > { %518 = shalt.err (!%p515_p6)
}
  0x1c   : > { %s519_s21 = scalar_lea.vmem %s710_s5, 128  ;;  %s616_s22 = smov [#allocation3]  }
  0x1d   : > { %p520_p8 = scmp.ne.s32.totalorder %s710_s5, %s519_s21  ;;  %s524_s25 = sshll.u32 %s616_s22, 4  ;;  %s525_s25 = int_to_ptr.vmem [resolvable:$false] %s524_s25 }
  0x1e   : > { %s526_s26 = scalar_lea.vmem %s525_s25, 256  ;;  %p527_p10 = scmp.lt.s32.totalorder %s710_s5, %s525_s25 }
  0x1f   : > { %p522_p11 = pnand %p520_p8, %p506_p12  ;;  %p528_p1 = scmp.lt.s32.totalorder %s526_s26, %s519_s21 }
  0x21   : > { %p523_p13 = pneg %p522_p11  ;;  %p529_p2 = por %p528_p1, %p527_p10 }
  0x23   : > { %p530_p3 = pnand %p529_p2, %p523_p13 }
  0x25   : > { %533 = shalt.err (!%p530_p3)
}
  0x26   : > { %s617_s27 = smov 128   ;;  %s618_s28 = smov 64  }
  0x27   : > { %s619_s29 = smov 4   ;;  %p170_p12 = scmp.lt.s32.totalorder %s614_s17, 3 }
  0x28   : > { %441 = dma.hbm_to_vmem [thread:$0]  (!%p706_p9), %s702_s30, 128, %s710_s5, %s713_s7, %s617_s27, %s618_s28, %s619_s29  }
  0x29   : > { %p816_p0 = scmp.ge.s32.totalorder %s614_s17, 1 }
  0x2b   : > { %p171_p4 = pnand %p816_p0, %p170_p12 }
  0x2c   : > { %s176_s4 = sand.u32 (!%p171_p4), 1, %s598_s13  }
  0x2d   : > { %174 = sbr.rel (%p171_p4) target bundleno = 779 (0x30b), region = 32  ;;  %s415_s8 = sshll.u32 (!%p171_p4), %s176_s4, 3 }
  0x2e   : > { %s177_s9 = scalar_lea.sflag (!%p171_p4), [#allocation4], %s176_s4  ;;  %s180_s10 = scalar_lea.vmem (!%p171_p4), [#allocation3], %s415_s8 }
  0x34   : > { %585 = dma.done.wait (%p689_p7), %s177_s9, 128  }
  0x35   : > { %587 = vsyncadd (%p689_p7), %s177_s9, 4294967168  ;;  %p416_p10 = scmp.ne.s32.totalorder %s606_s15, 0 }
  0x36   : > { %vm203_vm0 = vcmask (!%p416_p10), 25600   ;;  %v620_v0 = vmov (!%p416_p10), 0.0  }
  0x37   : > { %202 = sbr.rel (%p416_p10) target bundleno = 62 (0x3e), region = 40  ;;  %204 = vst.msk [vmem:[#allocation2] sm:$0x3] (!%p416_p10), %vm203_vm0, %v620_v0 }
  0x3e PF: > { %v205_v1 = vld [vmem:[%s180_s10] sm:$0xf]  ;;  %vm208_vm1 = vcmask 1043456   ;;  %v206_v2 = vld [vmem:[%s180_s10 + $0x4] sm:$0xf]  ;;  %v217_v5 = vlaneseq  ;;  %vm227_vm2 = vcmask 1041409  }
  0x3f   : > { %v209_v3 = vsel %vm208_vm1, %v205_v1, 0.0  ;;  %v212_v4 = vsel %vm208_vm1, %v206_v2, 0.0  ;;  %v207_v12 = vld [vmem:[#allocation2] sm:$0x3]  ;;  %vm231_vm3 = vcmask 25600   ;;  %p417_p7 = scmp.ne.s32.totalorder %s606_s15, 1 }
  0x40   : > { %210 = vadd.xlane.f32.xlu0 %v209_v3  ;;  %v218_v6 = vand.u32 127, %v217_v5  ;;  %v220_v7 = vshrl.u32 %v217_v5, 7  ;;  %v239_v16 = vld [vmem:[%s810_s1] sm:$0xf] (!%p417_p7)  ;;  %v621_v18 = vmov (!%p417_p7), 0.0   ;;  %vm622_vm4 = vmmov (!%p417_p7), 0  }
  0x41   : > { %427 = vmatprep.subr.mxu0 (!%p417_p7), %v621_v18  ;;  %429 = vmatprep.mubr.msk.f32.mxu0 (!%p417_p7), %vm622_vm4, %v621_v18  ;;  %vm247_vm5 = vcmask (!%p417_p7), 31744   ;;  %v418_v20 = vld [vmem:[%s811_s2] ss:$0 sm:$0xff] (!%p417_p7)  ;;  %vm324_vm6 = vcmask (!%p417_p7), 9216  }
  0x42   : > { %v221_v9 = vsub.s32 %v218_v6, %v220_v7  ;;  %428 = vmatpush3.msk.msra.mxu0 (!%p417_p7), %vm208_vm1, %v239_v16 }
  0x44   : > { %213 = vadd.xlane.f32.xlu0 %v212_v4 }
  0xcd   : > { %v211_v8 = vpop.xlane.xlu0 %210 }
  0xce   : > { %v222_v11 = vrot.slane %v211_v8, %v221_v9 }
  0xd1   : > { %v214_v10 = vpop.xlane.xlu0 %213  ;;  %236 = sbr.rel (%p417_p7) target bundleno = 754 (0x2f2), region = 44 }
  0xd2   : > { %v226_v13 = vrot.slane %v214_v10, %v221_v9 }
  0xd4   : > { %v228_v14 = vsel %vm227_vm2, %v226_v13, %v222_v11 }
  0xd5   : > { %v230_v15 = vadd.f32 %v228_v14, %v207_v12 }
  0xd7   : > { %232 = vst.msk [vmem:[#allocation2] sm:$0x3] %vm231_vm3, %v230_v15 }
  0xde   : > { %v237_v17 = vld [vmem:[#allocation2] sm:$0x3] }
  0xdf   : > { %v238_v19 = vmul.f32 0.00390625, %v237_v17 }
  0xe1   : > { %430 = vmatmul.mubr.msk.f32.vlgmr.msra.gmra.mrb[0].mxu0 %vm247_vm5, %v238_v19 }
 0x1b4   : > { %v320_v21 = vpop.f32.mrb[0].mxu0 }
 0x1b5   : > { %v321_v22 = vadd.f32 %v418_v20, %v320_v21  ;;  %v431_v23 = vpop.f32.mrb[1].mxu0 }
 0x1b7   : > { %v325_v24 = vsel %vm324_vm6, %v321_v22, -inf }
 0x1b8   : > { %326 = vmax.xlane.f32.xlu0 %v325_v24 }
 0x245   : > { %v327_v25 = vpop.xlane.xlu0 %326 }
 0x246   : > { %v328_v26 = vsub.f32 %v321_v22, %v327_v25 }
 0x248   : > { %v329_v27 = vmul.f32 1.442695, %v328_v26 }
 0x24a   : > { %500 = vpow2.f32 %v329_v27 }
 0x254   : > { %v501_v28 = vpop.eup %500 }
 0x255   : > { %v331_v29 = vsel %vm324_vm6, %v501_v28, 0.0 }
 0x256   : > { %332 = vadd.xlane.f32.xlu0 %v331_v29 }
 0x2e3   : > { %v333_v30 = vpop.xlane.xlu0 %332 }
 0x2e4   : > { %502 = vrcp.f32 %v333_v30 }
 0x2ee   : > { %v503_v31 = vpop.eup %502 }
 0x2ef   : > { %v335_v32 = vmul.f32 %v503_v31, %v501_v28 }
 0x2f1   : > { %336 = vst.msk [vmem:[#allocation6] sm:$0x3] %vm324_vm6, %v335_v32 }
 0x2f2 PF: > { %p765_p9 = scmp.eq.s32.totalorder %s409_s18, 1  ;;  %s623_s7 = smov [#allocation6]  }
 0x2f3   : > { %s346_s11 = sshll.u32 %s623_s7, 4  ;;  %s347_s11 = int_to_ptr.vmem [resolvable:$true] %s346_s11 }
 0x2f4   : > { %s534_s12 = scalar_lea.vmem %s347_s11, 32  ;;  %p541_p11 = scmp.lt.s32.totalorder %s347_s11, %s347_s11 }
 0x2f5   : > { %p535_p5 = scmp.ne.s32.totalorder %s347_s11, %s534_s12  ;;  %p542_p13 = scmp.lt.s32.totalorder %s534_s12, %s534_s12 }
 0x2f7   : > { %p536_p6 = pnand %p535_p5, %p765_p9  ;;  %p543_p1 = por %p542_p13, %p541_p11 }
 0x2f9   : > { %p537_p8 = pneg %p536_p6 }
 0x2fb   : > { %p544_p2 = pnand %p543_p1, %p537_p8 }
 0x2fd   : > { %547 = shalt.err (!%p544_p2)
}
 0x2fe   : > { %s548_s18 = scalar_lea.hbm %s812_s3, 32 }
 0x2ff   : > { %p549_p3 = scmp.ne.s32.totalorder %s812_s3, %s548_s18  ;;  %p554_p4 = scmp.lt.u32.totalorder %s548_s18, %s812_s3 }
 0x301   : > { %p550_p12 = pnand %p549_p3, %p765_p9 }
 0x303   : > { %p551_p0 = pneg %p550_p12 }
 0x305   : > { %p556_p10 = pnand %p554_p4, %p551_p0 }
 0x307   : > { %559 = shalt.err (!%p556_p10)
}
 0x308   : > { %435 = dma.vmem_to_hbm [thread:$0]  (%p765_p9), %s347_s11, 32, %s812_s3, [#allocation5]  }
 0x309   : > { %589 = dma.done.wait (%p765_p9), [#allocation5], 32  }
 0x30a   : > { %591 = vsyncadd (%p765_p9), [#allocation5], 4294967264 }
 0x30b PF: > { %s17_s17 = sadd.s32 1, %s614_s17   ;;  %s818_s12 = smov %s598_s13 }
 0x30c   : > { %p14_p7 = scmp.ge.s32.totalorder %s17_s17, 4   ;;  %s819_s13 = smov %s602_s14 }
 0x30d   : > { %s820_s14 = smov %s695_s24  ;;  %s821_s15 = smov %s610_s16 }
 0x30e   : > { %s822_s16 = smov %s824_s19  ;;  %16 = sbr.rel (!%p14_p7) target bundleno = 5 (0x5), region = 78 }
 0x315   :  { %359 = vsyncpa [#allocation4], 1 }
 0x316   :  { %361 = vsyncpa [#allocation4 + $0x1], 1 }
 0x317   :  { %362 = vsyncpa [#allocation5], 1 }
 0x318   :  { %364 = vsyncpa [#allocation5 + $0x1], 1 }

</bundles_post_ra>
